<compile_context>
chip_gen: v6e
topology: v6e:2x2x1
jax: 0.10.0
libtpu: 0.0.40
codegen_flags: <defaults>
</compile_context>

<pallas_src>
import functools

import jax
import jax.numpy as jnp
from jax.experimental import pallas as pl
from jax.experimental.pallas import tpu as pltpu


def _round_up(n: int, m: int) -> int:
    return ((n + m - 1) // m) * m


# -----------------------------------------------------------------------------
# One-time parameter prep (hoisted out of the per-call path).
# -----------------------------------------------------------------------------
def prepare_linear_params(w, b):
    """torch.nn.Linear stores W as [OUT, IN]; the kernel wants a lane-major RHS [IN, OUT].

    Do the transpose exactly once, outside the forward hot path.
    """
    return jnp.asarray(w).T, jnp.asarray(b)


# -----------------------------------------------------------------------------
# Small-shape path: single full-array block, no padding, no grid.
# -----------------------------------------------------------------------------
def _single_block_kernel(v_ref, wt_ref, b_ref, x_ref, o_ref):
    # v:[M,K]  wt:[K,N] (pre-transposed)  b:[1,N]  x:[M,N] or [1,N]
    y = jnp.dot(v_ref[...], wt_ref[...], preferred_element_type=jnp.float32)
    o_ref[...] = (y + b_ref[...] + x_ref[...]).astype(o_ref.dtype)


def _linear_add_single_block(v, wt, b, x):
    M, K = v.shape
    N = wt.shape[1]
    b2 = b.reshape(1, N)
    return pl.pallas_call(
        _single_block_kernel,
        out_shape=jax.ShapeDtypeStruct((M, N), v.dtype),
        in_specs=[
            pl.BlockSpec((M, K), lambda: (0, 0)),
            pl.BlockSpec((K, N), lambda: (0, 0)),
            pl.BlockSpec((1, N), lambda: (0, 0)),
            pl.BlockSpec(x.shape, lambda: (0, 0)),
        ],
        out_specs=pl.BlockSpec((M, N), lambda: (0, 0)),
    )(v, wt, b2, x)


# -----------------------------------------------------------------------------
# Realistic-shape path: tiled (tm, tn, tk) grid with f32 accumulator.
# -----------------------------------------------------------------------------
def _tiled_kernel(v_ref, wt_ref, b_ref, x_ref, o_ref, acc_ref):
    k = pl.program_id(2)

    @pl.when(k == 0)
    def _():
        # Fold the bias into the accumulator init: one sublane broadcast per output
        # tile instead of one per K step.
        acc_ref[...] = jnp.broadcast_to(
            b_ref[...].astype(jnp.float32), acc_ref.shape
        )

    acc_ref[...] += jnp.dot(
        v_ref[...], wt_ref[...], preferred_element_type=jnp.float32
    )

    @pl.when(k == pl.num_programs(2) - 1)
    def _():
        # Residual add only once, in the epilogue (not per K step), in f32.
        o_ref[...] = (acc_ref[...] + x_ref[...].astype(jnp.float32)).astype(o_ref.dtype)


def linear_add_tiled(v, wt, b, x, *, tm=256, tn=512, tk=512, use_bf16=True):
    """y = v @ wt + b + x with a pipelined (M, N, K) grid.

    v : [M, K] activations
    wt: [K, N] pre-transposed weight (lane-major RHS)
    b : [N]    bias
    x : [M, N] residual
    Tile notes: tn/tk multiples of 256 fill the v6e/v7x MXU; budget VMEM for the
    64 MiB/TC v7x case (these defaults use ~4 MiB with double-buffering).
    """
    M, K = v.shape
    N = wt.shape[1]

    # Clamp tiles to (padded) problem size; keep TPU-legal multiples (8 / 128).
    tm = min(tm, _round_up(M, 8))
    tn = min(tn, _round_up(N, 128))
    tk = min(tk, _round_up(K, 128))

    Mp, Kp, Np = _round_up(M, tm), _round_up(K, tk), _round_up(N, tn)

    v_p = v if (Mp == M and Kp == K) else jnp.pad(v, ((0, Mp - M), (0, Kp - K)))
    wt_p = wt if (Kp == K and Np == N) else jnp.pad(wt, ((0, Kp - K), (0, Np - N)))
    b_p = b.reshape(1, N)
    if Np != N:
        b_p = jnp.pad(b_p, ((0, 0), (0, Np - N)))
    x_p = x if (Mp == M and Np == N) else jnp.pad(x, ((0, Mp - M), (0, Np - N)))

    if use_bf16:
        # bf16 operands hit the rated MXU throughput and halve HBM traffic on the
        # K-streaming loop; accumulation stays f32 in the scratch accumulator.
        v_p = v_p.astype(jnp.bfloat16)
        wt_p = wt_p.astype(jnp.bfloat16)

    grid = (Mp // tm, Np // tn, Kp // tk)

    out_p = pl.pallas_call(
        _tiled_kernel,
        out_shape=jax.ShapeDtypeStruct((Mp, Np), v.dtype),
        grid_spec=pltpu.PrefetchScalarGridSpec(
            num_scalar_prefetch=0,
            grid=grid,
            in_specs=[
                pl.BlockSpec((tm, tk), lambda i, j, k: (i, k)),
                pl.BlockSpec((tk, tn), lambda i, j, k: (k, j)),
                pl.BlockSpec((1, tn), lambda i, j, k: (0, j)),
                pl.BlockSpec((tm, tn), lambda i, j, k: (i, j)),
            ],
            out_specs=pl.BlockSpec((tm, tn), lambda i, j, k: (i, j)),
            scratch_shapes=[pltpu.VMEM((tm, tn), jnp.float32)],
        ),
        compiler_params=pltpu.CompilerParams(
            # M/N 'parallel' -> v7x megacore sharding; K 'arbitrary' (reduction).
            dimension_semantics=("parallel", "parallel", "arbitrary"),
            vmem_limit_bytes=64 * 1024 * 1024,
        ),
    )(v_p, wt_p, b_p, x_p)

    if Mp != M or Np != N:
        out_p = out_p[:M, :N]
    return out_p


# -----------------------------------------------------------------------------
# Forward: v2 = linear1(v) + x
# -----------------------------------------------------------------------------
@functools.partial(jax.jit, static_argnames=())
def model_forward(v, wt, b, x):
    """v:[B,IN], wt:[IN,OUT] (pre-transposed), b:[OUT], x:[B,OUT] or [1,OUT]."""
    M, K = v.shape
    N = wt.shape[1]
    # Everything comfortably in one VMEM block? Skip the grid entirely.
    approx_bytes = 4 * (M * K + K * N + M * N * 2)
    if approx_bytes <= (4 << 20):
        return _linear_add_single_block(v, wt, b, x)
    return linear_add_tiled(v, wt, b, x)


if __name__ == "__main__":
    key = jax.random.PRNGKey(0)
    k1, k2, k3, k4 = jax.random.split(key, 4)

    B, IN, OUT = 2, 16, 32

    # Deterministic init mimicking torch.nn.Linear uniform(-1/sqrt(in), 1/sqrt(in)).
    bound = 1.0 / jnp.sqrt(jnp.float32(IN))
    w1 = jax.random.uniform(k1, (OUT, IN), jnp.float32, -bound, bound)
    b1 = jax.random.uniform(k2, (OUT,), jnp.float32, -bound, bound)
    # TODO(synk): linear2 (32->64) exists in the torch module but is dead code in forward; omitted.

    v = jax.random.normal(k3, (B, IN), jnp.float32)
    x = jax.random.normal(k4, (B, OUT), jnp.float32)

    # Hoisted, one-time layout prep (not part of the per-call path).
    w1_t, b1_prep = prepare_linear_params(w1, b1)

    out = model_forward(v, w1_t, b1_prep, x)
    jax.block_until_ready(out)

    ref = v @ w1.T + b1[None, :] + x
    assert out.shape == (B, OUT)
    assert jnp.allclose(out, ref, atol=1e-5, rtol=1e-5), "small-path mismatch vs reference"

    # Also exercise the tiled / realistic-size path (bf16 MXU operands, f32 accumulate).
    M2, K2, N2 = 256, 512, 512
    kk = jax.random.split(jax.random.PRNGKey(1), 4)
    vb = jax.random.normal(kk[0], (M2, K2), jnp.float32)
    wb = jax.random.uniform(kk[1], (N2, K2), jnp.float32, -0.05, 0.05)
    bb = jax.random.uniform(kk[2], (N2,), jnp.float32, -0.05, 0.05)
    xb = jax.random.normal(kk[3], (M2, N2), jnp.float32)
    wb_t, bb_prep = prepare_linear_params(wb, bb)

    out2 = linear_add_tiled(vb, wb_t, bb_prep, xb, tm=128, tn=256, tk=256)
    jax.block_until_ready(out2)
    ref2 = vb @ wb.T + bb[None, :] + xb
    assert out2.shape == (M2, N2)
    assert jnp.allclose(out2, ref2, atol=5e-2, rtol=5e-2), "tiled-path mismatch vs reference"

    print("KERNEL_OK")
</pallas_src>

<mosaic_0001>
module attributes {stable_mosaic.version = 11 : i64} {
  func.func @_single_block_kernel(%arg0: memref<2x16xf32, #tpu.memory_space<vmem>>, %arg1: memref<16x32xf32, #tpu.memory_space<vmem>>, %arg2: memref<1x32xf32, #tpu.memory_space<vmem>>, %arg3: memref<2x32xf32, #tpu.memory_space<vmem>>, %arg4: memref<2x32xf32, #tpu.memory_space<vmem>>) attributes {dimension_semantics = [], scalar_prefetch = 0 : i64, scratch_operands = 0 : i64, tpu.core_type = #tpu.core_type<tc>} {
    %c0 = arith.constant 0 : index
    %c0_0 = arith.constant 0 : index
    %0 = vector.load %arg0[%c0, %c0_0] : memref<2x16xf32, #tpu.memory_space<vmem>>, vector<2x16xf32>
    %c0_1 = arith.constant 0 : index
    %c0_2 = arith.constant 0 : index
    %1 = vector.load %arg1[%c0_1, %c0_2] : memref<16x32xf32, #tpu.memory_space<vmem>>, vector<16x32xf32>
    %cst = arith.constant dense<0.000000e+00> : vector<2x32xf32>
    %2 = tpu.matmul %0, %1, %cst {dimension_numbers = #tpu.dot_dimension_numbers<[1], [0], [0], [1], [0, 0, 1, 1], [], []>} : vector<2x16xf32>, vector<16x32xf32>, vector<2x32xf32> -> vector<2x32xf32>
    %c0_3 = arith.constant 0 : index
    %c0_4 = arith.constant 0 : index
    %3 = vector.load %arg2[%c0_3, %c0_4] : memref<1x32xf32, #tpu.memory_space<vmem>>, vector<1x32xf32>
    %4 = vector.broadcast %3 : vector<1x32xf32> to vector<2x32xf32>
    %5 = arith.addf %2, %4 : vector<2x32xf32>
    %c0_5 = arith.constant 0 : index
    %c0_6 = arith.constant 0 : index
    %6 = vector.load %arg3[%c0_5, %c0_6] : memref<2x32xf32, #tpu.memory_space<vmem>>, vector<2x32xf32>
    %7 = arith.addf %5, %6 : vector<2x32xf32>
    %c0_7 = arith.constant 0 : index
    %c0_8 = arith.constant 0 : index
    %8 = vector.load %arg4[%c0_7, %c0_8] : memref<2x32xf32, #tpu.memory_space<vmem>>, vector<2x32xf32>
    tpu.vector_store %arg4[%c0_7, %c0_8], %7 {strides = array<i32>} : memref<2x32xf32, #tpu.memory_space<vmem>>, vector<2x32xf32>,
    return
  }
}

</mosaic_0001>

<bundles_post_ra>
// kernel: model_forward.1
= control target key start
LH: loop header
LB: loop body
LE: loop exit
PB: predicated region body
PF: predicated region fallthrough
CT: control target
= control target key end

     0   :  { %9 = vsyncpa [#allocation3], 0  ;;  %s280_s0 = inlined_call_operand.hbm [shape: f32[2,16], index: 0, kind: input, shape index: {}]   ;;  %s281_s1 = inlined_call_operand.hbm [shape: f32[16,32], index: 1, kind: input, shape index: {}]   ;;  %s282_s2 = inlined_call_operand.vmem [shape: f32[1,32], index: 2, kind: input, shape index: {}]   ;;  %s283_s3 = inlined_call_operand.vmem [shape: f32[2,32], index: 3, kind: input, shape index: {}]   ;;  %s284_s4 = inlined_call_operand.hbm [shape: f32[2,32], index: 4, kind: output, shape index: {}]  }
   0x1   :  { %10 = vsyncpa [#allocation6], 0 }
   0x2   :  { %11 = vsyncpa [#allocation4], 0  ;;  %s233_s15 = smov [#allocation2]   ;;  %s234_s17 = smov [#allocation5]  }
   0x3   :  { %s18_s16 = sshll.u32 %s233_s15, 4  ;;  %s27_s18 = sshll.u32 %s234_s17, 4  ;;  %s19_s16 = int_to_ptr.vmem [resolvable:$true] %s18_s16  ;;  %s28_s18 = int_to_ptr.vmem [resolvable:$true] %s27_s18 }
   0x4   :  { %s175_s19 = scalar_lea.vmem %s19_s16, 32  ;;  %p180_p1 = scmp.lt.s32.totalorder %s19_s16, %s19_s16 }
   0x5   :  { %p176_p0 = scmp.ne.s32.totalorder %s19_s16, %s175_s19  ;;  %p181_p2 = scmp.lt.s32.totalorder %s175_s19, %s175_s19 }
   0x7   :  { %p182_p3 = por %p181_p2, %p180_p1 }
   0x9   :  { %p183_p4 = pnand %p182_p3, %p176_p0 }
   0xb   :  { %186 = shalt.err (!%p183_p4)
}
   0xc   :  { %21 = dma.hbm_to_vmem [thread:$0]  %s280_s0, 32, %s19_s16, [#allocation3]  }
   0xd   :  { %s195_s22 = scalar_lea.vmem %s28_s18, 256  ;;  %p200_p6 = scmp.lt.s32.totalorder %s28_s18, %s28_s18 }
   0xe   :  { %p196_p5 = scmp.ne.s32.totalorder %s28_s18, %s195_s22  ;;  %p201_p7 = scmp.lt.s32.totalorder %s195_s22, %s195_s22 }
  0x10   :  { %p202_p8 = por %p201_p7, %p200_p6 }
  0x12   :  { %p203_p9 = pnand %p202_p8, %p196_p5 }
  0x14   :  { %206 = shalt.err (!%p203_p9)
}
  0x15   :  { %s235_s23 = smov 128   ;;  %s236_s24 = smov 8  }
  0x16   :  { %33 = dma.hbm_to_vmem [thread:$0]  %s281_s1, 256, %s28_s18, [#allocation6], %s235_s23, %s235_s23, %s236_s24  }
  0x17   :  { %227 = dma.done.wait [#allocation3], 32  }
  0x18   :  { %228 = vsyncadd [#allocation3], 4294967264 }
  0x19   :  { %229 = dma.done.wait [#allocation6], 256  }
  0x1a   :  { %230 = vsyncadd [#allocation6], 4294967040  ;;  %v237_v0 = vmov 0.0   ;;  %vm238_vm0 = vmmov 0   ;;  %v46_v1 = vld [vmem:[#allocation5 + $0x8] sm:$0xff]  ;;  %v45_v2 = vld [vmem:[#allocation5] sm:$0xff] }
  0x1b   :  { %153 = vmatprep.subr.mxu0 %v237_v0  ;;  %157 = vmatprep.mubr.msk.f32.mxu0 %vm238_vm0, %v237_v0  ;;  %v44_v3 = vld [vmem:[#allocation2] sm:$0x3]  ;;  %vm54_vm1 = vcmask 130048   ;;  %s239_s29 = smov [#allocation7]   ;;  %vm130_vm2 = vcmask 254976  }
  0x1c   :  { %154 = vmatpush3.msra.mxu0 %v46_v1  ;;  %v148_v4 = vld [vmem:[%s282_s2] ss:$0 sm:$0xff]  ;;  %s138_s30 = sshll.u32 %s239_s29, 4  ;;  %s139_s30 = int_to_ptr.vmem [resolvable:$true] %s138_s30 }
  0x1d   :  { %155 = vmatprep.subr.mxu0 %v237_v0  ;;  %v128_v6 = vld [vmem:[%s283_s3] sm:$0x3]  ;;  %s207_s5 = scalar_lea.vmem %s139_s30, 32  ;;  %p212_p11 = scmp.lt.s32.totalorder %s139_s30, %s139_s30 }
  0x1e   :  { %156 = vmatpush3.msra.mxu0 %v45_v2  ;;  %p208_p10 = scmp.ne.s32.totalorder %s139_s30, %s207_s5  ;;  %p213_p12 = scmp.lt.s32.totalorder %s207_s5, %s207_s5 }
  0x1f   :  { %158 = vmatmul.mubr.msk.f32.vlgmr.msra.gmra.mxu0 %vm54_vm1, %v44_v3 }
  0x20   :  { %p214_p13 = por %p213_p12, %p212_p11 }
  0x22   :  { %p215_p0 = pnand %p214_p13, %p208_p10 }
  0xdf   :  { %v124_v5 = vpop.f32.mrf.mxu0 }
  0xe0   :  { %v125_v7 = vadd.f32 %v148_v4, %v124_v5 }
  0xe1   :  { %v159_v8 = vpop.f32.mrf.mxu0 }
  0xe2   :  { %v129_v9 = vadd.f32 %v128_v6, %v125_v7 }
  0xe4   :  { %131 = vst.msk [vmem:[#allocation7] sm:$0x3] %vm130_vm2, %v129_v9 }
  0xe5   :  { %218 = shalt.err (!%p215_p0)
}
  0xe6   :  { %141 = dma.vmem_to_hbm [thread:$0]  %s139_s30, 32, %s284_s4, [#allocation4]  }
  0xe7   :  { %231 = dma.done.wait [#allocation4], 32  }
  0xe8   :  { %232 = vsyncadd [#allocation4], 4294967264 }
  0xe9   :  { %145 = vsyncpa [#allocation3], 1 }
  0xea   :  { %146 = vsyncpa [#allocation6], 1 }
  0xeb   :  { %147 = vsyncpa [#allocation4], 1 }

</bundles_post_ra>
